<compile_context>
chip_gen: v6e
topology: v6e:2x2x1
jax: 0.10.0
libtpu: 0.0.40
codegen_flags: <defaults>
</compile_context>

<pallas_src>
import math

import jax
import jax.numpy as jnp
from jax.experimental import pallas as pl
from jax.experimental.pallas import tpu as pltpu


# Below this output size, skip the kernel entirely (XLA fuses the broadcast).
_SMALL_FAST_PATH_BYTES = 256 * 1024
# Above this output size, force >= 2 parallel grid steps (v7x has 2 TCs).
_MULTI_STEP_BYTES = 2 << 20
# Per-block VMEM byte budget (double-buffered => 8 MiB; fits v5e's 16 MiB
# default scoped VMEM with room for the tiny token buffers).
_MAX_BLOCK_BYTES = 4 << 20


def _broadcast_token_kernel(tok_ref, out_ref):
    # tok_ref: (1, packed_row) VMEM tile of the (tiled) parameter
    # out_ref: (block_rows, packed_row) VMEM tile of the output slab
    # NOTE: a stride-0 sublane-broadcast read was suggested for v5e; kept as
    # jnp.broadcast_to for portability — the kernel stays store-bound either way.
    out_ref[...] = jnp.broadcast_to(tok_ref[...], out_ref.shape)


def _pick_block_rows(rows: int, row_bytes: int,
                     max_block_bytes: int = _MAX_BLOCK_BYTES,
                     min_steps: int = 1) -> int:
    """Rows of the packed output slab handled per grid step.

    Always bounded by the byte budget; sublane (x8) aligned whenever the block
    does not cover the full row dim (the partial tail block is masked, which
    is correct).  `min_steps` lets the caller force a parallel split for v7x.
    """
    budget_rows = max(1, max_block_bytes // max(1, row_bytes))
    step_rows = max(1, -(-rows // min_steps))          # ceil(rows / min_steps)
    block = min(rows, budget_rows, step_rows)
    if block < rows:
        block = max(8, (block // 8) * 8)               # sublane-aligned tiles
        block = min(block, rows)                       # (== rows => full dim)
    return block


def broadcast_token(token: jax.Array, batch: int, *,
                    force_kernel: bool = False) -> jax.Array:
    """Repeat a (1, n, e) token to (batch, n, e); Pallas kernel for large outputs."""
    one, n, e = token.shape
    assert one == 1, "token leading dim must be 1"
    row = n * e
    itemsize = jnp.dtype(token.dtype).itemsize
    total_bytes = batch * row * itemsize

    if not force_kernel and total_bytes <= _SMALL_FAST_PATH_BYTES:
        # Tiny output: let XLA fuse the broadcast into the consumer instead of
        # paying a kernel launch + standalone HBM write-then-reread.
        return jnp.broadcast_to(token, (batch, n, e))

    # ---- lane-dense packing: k batch rows per output slab row --------------
    k = 1
    if row % 128 != 0:
        g = 128 // math.gcd(row, 128)      # smallest k with (k*row) % 128 == 0
        k = math.gcd(batch, g)             # largest such (partial) k dividing batch
    rows_packed = batch // k
    packed_row = k * row
    row_bytes = packed_row * itemsize

    tok2d = token.reshape(1, row)
    if k > 1:
        tok2d = jnp.tile(tok2d, (1, k))    # (1, packed_row) — cheap 1-row op

    # ---- tiling --------------------------------------------------------------
    min_steps = 2 if (total_bytes > _MULTI_STEP_BYTES and rows_packed >= 16) else 1
    block_rows = _pick_block_rows(rows_packed, row_bytes, min_steps=min_steps)
    grid = (pl.cdiv(rows_packed, block_rows),)

    out2d = pl.pallas_call(
        _broadcast_token_kernel,
        out_shape=jax.ShapeDtypeStruct((rows_packed, packed_row), token.dtype),
        grid_spec=pltpu.PrefetchScalarGridSpec(
            num_scalar_prefetch=0,
            grid=grid,
            # The parameter is one tiny block, identical for every grid step.
            in_specs=[pl.BlockSpec((1, packed_row), lambda i: (0, 0))],
            # Each grid step writes a lane-dense, sublane-aligned slab of rows.
            out_specs=pl.BlockSpec((block_rows, packed_row), lambda i: (i, 0)),
        ),
        compiler_params=pltpu.CompilerParams(
            dimension_semantics=("parallel",),
        ),
        # Pure data movement: read the token once, write the full output.
        cost_estimate=pl.CostEstimate(
            flops=0,
            transcendentals=0,
            bytes_accessed=int(total_bytes + row_bytes),
        ),
    )(tok2d)

    return out2d.reshape(batch, n, e)


class ViTTokensPallas:
    """JAX/Pallas equivalent of the PyTorch ViTTokens module."""

    def __init__(self, emb_size: int, key: jax.Array):
        # nn.Parameter(torch.randn(1, 1, emb_size)) -> deterministic normal init
        self.cls = jax.random.normal(key, (1, 1, emb_size), dtype=jnp.float32)
        self._params = [self.cls]

    def __call__(self, x: jax.Array):
        b = x.shape[0]
        return [broadcast_token(token, b) for token in self._params]

    def __len__(self):
        return len(self._params)


if __name__ == "__main__":
    key = jax.random.PRNGKey(0)
    k_param, k_x = jax.random.split(key)

    emb_size = 32
    batch, seq = 2, 8

    module = ViTTokensPallas(emb_size, k_param)

    # Input x: (B, N, E) — only its batch dim matters to the forward.
    x = jax.random.normal(k_x, (batch, seq, emb_size), dtype=jnp.float32)

    # Module forward (small output -> fused jnp.broadcast_to fast path).
    tokens = module(x)
    tokens = [jax.block_until_ready(t) for t in tokens]
    ref = jnp.broadcast_to(module.cls, (batch, 1, emb_size))
    assert len(tokens) == 1 and len(module) == 1
    assert tokens[0].shape == (batch, 1, emb_size)
    assert tokens[0].dtype == jnp.float32
    assert jnp.allclose(tokens[0], ref)

    # Explicitly exercise the Pallas kernel: batch=16, E=32 packs to a fully
    # lane-dense (4, 128) output slab.
    kb = 16
    out_k = jax.block_until_ready(
        broadcast_token(module.cls, kb, force_kernel=True))
    assert out_k.shape == (kb, 1, emb_size)
    assert jnp.allclose(out_k, jnp.broadcast_to(module.cls, (kb, 1, emb_size)))

    # Kernel path where the batch only partially packs (k=2 -> (1, 64) slab,
    # full-dim block, masked store — still correct).
    out_k2 = jax.block_until_ready(
        broadcast_token(module.cls, batch, force_kernel=True))
    assert jnp.allclose(out_k2, ref)

    print("KERNEL_OK")
</pallas_src>

<mosaic_0001>
module attributes {stable_mosaic.version = 11 : i64} {
  func.func @_broadcast_token_kernel(%arg0: i32, %arg1: memref<1x128xf32, #tpu.memory_space<vmem>>, %arg2: memref<4x128xf32, #tpu.memory_space<vmem>>) attributes {dimension_semantics = [#tpu.dimension_semantics<parallel>], iteration_bounds = array<i64: 1>, scalar_prefetch = 0 : i64, scratch_operands = 0 : i64, tpu.core_type = #tpu.core_type<tc>, window_params = [{pipeline_mode = #tpu.pipeline_mode<synchronous>, transform_indices = @transform_0, window_bounds = array<i64: 1, 128>}, {transform_indices = @transform_1, window_bounds = array<i64: 4, 128>}]} {
    %c0 = arith.constant 0 : index
    %c0_0 = arith.constant 0 : index
    %0 = vector.load %arg1[%c0, %c0_0] : memref<1x128xf32, #tpu.memory_space<vmem>>, vector<1x128xf32>
    %1 = vector.shape_cast %0 : vector<1x128xf32> to vector<1x128xf32>
    %2 = vector.broadcast %1 : vector<1x128xf32> to vector<4x128xf32>
    %c0_1 = arith.constant 0 : index
    %c0_2 = arith.constant 0 : index
    %3 = vector.load %arg2[%c0_1, %c0_2] : memref<4x128xf32, #tpu.memory_space<vmem>>, vector<4x128xf32>
    tpu.vector_store %arg2[%c0_1, %c0_2], %2 {strides = array<i32>} : memref<4x128xf32, #tpu.memory_space<vmem>>, vector<4x128xf32>,
    return
  }
  func.func @transform_0(%arg0: i32) -> (i32, i32) {
    %c0_i32 = arith.constant 0 : i32
    %c0_i32_0 = arith.constant 0 : i32
    %c0_i32_1 = arith.constant 0 : i32
    return %c0_i32, %c0_i32_0 : i32, i32
  }
  func.func @transform_1(%arg0: i32) -> (i32, i32) {
    %c0_i32 = arith.constant 0 : i32
    %c0_i32_0 = arith.constant 0 : i32
    return %arg0, %c0_i32 : i32, i32
  }
}

</mosaic_0001>

<bundles_post_ra>
// kernel: tpu_custom_call.1
= control target key start
LH: loop header
LB: loop body
LE: loop exit
PB: predicated region body
PF: predicated region fallthrough
CT: control target
= control target key end

     0   :  { %6 = vsyncpa [#allocation3], 0  ;;  %s109_s0 = inlined_call_operand.hbm [shape: f32[1,128], index: 0, kind: input, shape index: {}]   ;;  %s110_s1 = inlined_call_operand.hbm [shape: f32[4,128], index: 1, kind: output, shape index: {}]  }
   0x1   :  { %7 = vsyncpa [#allocation4], 0  ;;  %s91_s6 = smov [#allocation2]  }
   0x2   :  { %s14_s7 = sshll.u32 %s91_s6, 4  ;;  %s15_s7 = int_to_ptr.vmem [resolvable:$true] %s14_s7 }
   0x3   :  { %s55_s8 = scalar_lea.vmem %s15_s7, 16  ;;  %s59_s9 = scalar_lea.vmem %s15_s7, 32 }
   0x4   :  { %p56_p0 = scmp.ne.s32.totalorder %s15_s7, %s55_s8  ;;  %p60_p1 = scmp.lt.s32.totalorder %s15_s7, %s15_s7 }
   0x5   :  { %p61_p2 = scmp.lt.s32.totalorder %s59_s9, %s55_s8 }
   0x7   :  { %p62_p3 = por %p61_p2, %p60_p1 }
   0x9   :  { %p63_p4 = pnand %p62_p3, %p56_p0 }
   0xb   :  { %66 = shalt.err (!%p63_p4)
}
   0xc   :  { %17 = dma.hbm_to_vmem [thread:$0]  %s109_s0, 16, %s15_s7, [#allocation3]  }
   0xd   :  { %87 = dma.done.wait [#allocation3], 16  }
   0xe   :  { %88 = vsyncadd [#allocation3], 4294967280  ;;  %s92_s12 = smov [#allocation5]   ;;  %v44_v0 = vld [vmem:[#allocation2] ss:$0 sm:$0xff] }
   0xf   :  { %s35_s13 = sshll.u32 %s92_s12, 4  ;;  %28 = vst [vmem:[#allocation5] sm:$0xf] %v44_v0  ;;  %s36_s13 = int_to_ptr.vmem [resolvable:$true] %s35_s13 }
  0x10   :  { %s67_s14 = scalar_lea.vmem %s36_s13, 64  ;;  %p72_p6 = scmp.lt.s32.totalorder %s36_s13, %s36_s13 }
  0x11   :  { %p68_p5 = scmp.ne.s32.totalorder %s36_s13, %s67_s14  ;;  %p73_p7 = scmp.lt.s32.totalorder %s67_s14, %s67_s14 }
  0x13   :  { %p74_p8 = por %p73_p7, %p72_p6 }
  0x15   :  { %p75_p9 = pnand %p74_p8, %p68_p5 }
  0x17   :  { %78 = shalt.err (!%p75_p9)
}
  0x18   :  { %38 = dma.vmem_to_hbm [thread:$0]  %s36_s13, 64, %s110_s1, [#allocation4]  }
  0x19   :  { %89 = dma.done.wait [#allocation4], 64  }
  0x1a   :  { %90 = vsyncadd [#allocation4], 4294967232 }
  0x1b   :  { %42 = vsyncpa [#allocation3], 1 }
  0x1c   :  { %43 = vsyncpa [#allocation4], 1 }

</bundles_post_ra>
